<compile_context>
chip_gen: v7x
topology: tpu7x:2x2x1
jax: 0.10.0
libtpu: 0.0.40
codegen_flags: <defaults>
</compile_context>

<pallas_src>
import jax
import jax.numpy as jnp
from jax.experimental import pallas as pl
from jax.experimental.pallas import tpu as pltpu

SUBLANE = 8
LANE = 128


def _round_up(x: int, m: int) -> int:
    return ((x + m - 1) // m) * m


def _round_down(x: int, m: int) -> int:
    return (x // m) * m


def _pitch_kernel(frames_ref, w_ref, out_ref):
    # frames_ref: [TM, frame_len]  natural row-major frame tiles (no transpose)
    # w_ref:      [1, frame_len]   surrogate channel-0 feature weights
    # out_ref:    [TM, 1]          one pitch value per frame
    x = frames_ref[...]                                     # [TM, L]
    w = w_ref[...]                                          # [1, L] -> sublane broadcast
    # TODO(synk): the real LibOPUSBinding.extract_pitch (native libopus pitch
    # analysis, overlapping windows) has no clean Pallas equivalent; this
    # deterministic linear feature + tanh normalization stands in for channel 0.
    feat0 = jnp.sum(x * w, axis=-1, keepdims=True)          # VPU mul + XLU lane reduce
    p = jnp.tanh(feat0)                                     # EUP; "pitch" in [-1, 1]
    # Exact post-processing from the module's forward():
    #   out = (60 * (out[..., 0] + 1.5)).round()   (round-half-to-even, as torch)
    out_ref[...] = jnp.round(60.0 * (p + 1.5))


def _pick_tile_rows(bn_pad: int, frame_len: int):
    """Derive the row-tile size from a per-generation VMEM budget."""
    try:
        vmem_cap = int(pltpu.get_tpu_info().vmem_capacity_bytes)
    except Exception:  # not on TPU / API unavailable: assume the smallest (v7x, 64 MiB)
        vmem_cap = 64 << 20
    vmem_limit = max(min(vmem_cap // 2, 48 << 20), 16 << 20)
    usable = vmem_limit - (2 << 20)                          # slack for w block + misc
    # VMEM bytes per frame row: lane-padded input row + lane-padded output row (f32).
    per_row = (_round_up(frame_len, LANE) + LANE) * 4
    tm = _round_down(usable // (2 * per_row), SUBLANE)       # 2x = double buffering
    tm = max(SUBLANE, tm)
    # Keep >= ~8 grid steps when rows allow, so "parallel" shards over v7x's 2 TCs.
    tm = min(tm, max(SUBLANE, _round_up(pl.cdiv(bn_pad, 8), SUBLANE)))
    tm = min(tm, bn_pad)
    return tm, vmem_limit


def amazon_encoder_forward(x, w0, *, frame_len, tile_rows=None):
    """x: [B, T] float32 audio; w0: [frame_len] surrogate channel-0 weights."""
    B, T = x.shape
    n_frames = T // frame_len
    bn = B * n_frames

    x = x.astype(jnp.float32)
    # Natural contiguous layout.  When T % frame_len == 0 this is a free,
    # metadata-only reshape; otherwise XLA does one slice copy to drop the
    # trailing samples (the surrogate framing is non-overlapping).
    frames = x[:, : n_frames * frame_len].reshape(bn, frame_len)

    # Pad rows only to the sublane quantum (<= 7 junk rows), never to the tile.
    bn_pad = _round_up(bn, SUBLANE)
    if bn_pad != bn:
        frames = jnp.pad(frames, ((0, bn_pad - bn), (0, 0)))

    tm, vmem_limit = _pick_tile_rows(bn_pad, frame_len)
    if tile_rows is not None:
        tm = max(SUBLANE, _round_down(min(tile_rows, bn_pad), SUBLANE))
    grid = (pl.cdiv(bn_pad, tm),)

    w_row = w0.reshape(1, frame_len).astype(jnp.float32)

    cost = pl.CostEstimate(
        flops=2 * bn_pad * frame_len,
        transcendentals=bn_pad,
        bytes_accessed=bn_pad * frame_len * 4 + bn_pad * 4,
    )

    out = pl.pallas_call(
        _pitch_kernel,
        out_shape=jax.ShapeDtypeStruct((bn_pad, 1), jnp.float32),
        grid=grid,
        in_specs=[
            pl.BlockSpec((tm, frame_len), lambda i: (i, 0)),   # streaming frame-row tiles
            pl.BlockSpec((1, frame_len), lambda i: (0, 0)),    # tiny resident weight row
        ],
        out_specs=pl.BlockSpec((tm, 1), lambda i: (i, 0)),     # one value per frame
        compiler_params=pltpu.CompilerParams(
            dimension_semantics=("parallel",),
            vmem_limit_bytes=vmem_limit,
        ),
        cost_estimate=cost,
    )(frames, w_row)

    # One "pitch" value per frame, per batch element.
    return out[:bn, 0].reshape(B, n_frames)


if __name__ == "__main__":
    key = jax.random.PRNGKey(0)
    kx, kw, kp = jax.random.split(key, 3)

    B, T = 2, 256                  # batch of 2 short audio clips
    FRAME_LEN = 32                 # surrogate pitch-analysis frame size

    x = jax.random.normal(kx, (B, T), dtype=jnp.float32)
    w0 = jax.random.normal(kw, (FRAME_LEN,), dtype=jnp.float32) / (FRAME_LEN ** 0.5)

    # Mirrors nn.Parameter(torch.rand(1)); unused in forward(), kept for parity.
    dummy_parameter = jax.random.uniform(kp, (1,), dtype=jnp.float32)

    out = amazon_encoder_forward(x, w0, frame_len=FRAME_LEN)
    jax.block_until_ready(out)

    n_frames = T // FRAME_LEN
    assert out.shape == (B, n_frames), out.shape
    assert out.dtype == jnp.float32

    # Pure-JAX reference of the same surrogate + exact forward() post-processing.
    frames_ref = x.reshape(B * n_frames, FRAME_LEN)
    ref = jnp.round(60.0 * (jnp.tanh(frames_ref @ w0) + 1.5)).reshape(B, n_frames)
    # EUP tanh can differ in the last ULP from XLA's, flipping exact .5 boundaries.
    assert bool(jnp.all(jnp.abs(out - ref) <= 1.0))
    # Output must be integral (round) and in the plausible 60*([-1,1]+1.5) range.
    assert bool(jnp.all(out == jnp.round(out)))
    assert bool(jnp.all((out >= 30.0) & (out <= 150.0)))

    print("KERNEL_OK")
</pallas_src>

<mosaic_0001>
module attributes {stable_mosaic.version = 11 : i64} {
  func.func @_pitch_kernel(%arg0: i32, %arg1: memref<8x32xf32, #tpu.memory_space<vmem>>, %arg2: memref<1x32xf32, #tpu.memory_space<vmem>>, %arg3: memref<8x1xf32, #tpu.memory_space<vmem>>) attributes {dimension_semantics = [#tpu.dimension_semantics<parallel>], iteration_bounds = array<i64: 2>, scalar_prefetch = 0 : i64, scratch_operands = 0 : i64, tpu.core_type = #tpu.core_type<tc>, window_params = [{transform_indices = @transform_0, window_bounds = array<i64: 8, 32>}, {pipeline_mode = #tpu.pipeline_mode<synchronous>, transform_indices = @transform_1, window_bounds = array<i64: 1, 32>}, {transform_indices = @transform_2, window_bounds = array<i64: 8, 1>}]} {
    %c0 = arith.constant 0 : index
    %c0_0 = arith.constant 0 : index
    %0 = vector.load %arg1[%c0, %c0_0] : memref<8x32xf32, #tpu.memory_space<vmem>>, vector<8x32xf32>
    %c0_1 = arith.constant 0 : index
    %c0_2 = arith.constant 0 : index
    %1 = vector.load %arg2[%c0_1, %c0_2] : memref<1x32xf32, #tpu.memory_space<vmem>>, vector<1x32xf32>
    %2 = vector.broadcast %1 : vector<1x32xf32> to vector<8x32xf32>
    %3 = arith.mulf %0, %2 : vector<8x32xf32>
    %cst = arith.constant dense<0.000000e+00> : vector<8xf32>
    %4 = vector.multi_reduction <add>, %3, %cst [1] : vector<8x32xf32> to vector<8xf32>
    %5 = vector.shape_cast %4 : vector<8xf32> to vector<8x1xf32>
    %6 = math.tanh %5 : vector<8x1xf32>
    %cst_3 = arith.constant 1.500000e+00 : f32
    %7 = vector.broadcast %cst_3 : f32 to vector<8x1xf32>
    %8 = arith.addf %6, %7 : vector<8x1xf32>
    %cst_4 = arith.constant 6.000000e+01 : f32
    %9 = vector.broadcast %cst_4 : f32 to vector<8x1xf32>
    %10 = arith.mulf %9, %8 : vector<8x1xf32>
    %11 = math.roundeven %10 : vector<8x1xf32>
    %c0_5 = arith.constant 0 : index
    %c0_6 = arith.constant 0 : index
    %12 = vector.load %arg3[%c0_5, %c0_6] : memref<8x1xf32, #tpu.memory_space<vmem>>, vector<8x1xf32>
    tpu.vector_store %arg3[%c0_5, %c0_6], %11 {strides = array<i32>} : memref<8x1xf32, #tpu.memory_space<vmem>>, vector<8x1xf32>,
    return
  }
  func.func @transform_0(%arg0: i32) -> (i32, i32) {
    %c0_i32 = arith.constant 0 : i32
    %c0_i32_0 = arith.constant 0 : i32
    return %arg0, %c0_i32 : i32, i32
  }
  func.func @transform_1(%arg0: i32) -> (i32, i32) {
    %c0_i32 = arith.constant 0 : i32
    %c0_i32_0 = arith.constant 0 : i32
    %c0_i32_1 = arith.constant 0 : i32
    return %c0_i32, %c0_i32_0 : i32, i32
  }
  func.func @transform_2(%arg0: i32) -> (i32, i32) {
    %c0_i32 = arith.constant 0 : i32
    %c0_i32_0 = arith.constant 0 : i32
    return %arg0, %c0_i32 : i32, i32
  }
}

</mosaic_0001>

<bundles_post_ra>
// kernel: tpu_custom_call.1
= control target key start
LH: loop header
LB: loop body
LE: loop exit
PB: predicated region body
PF: predicated region fallthrough
CT: control target
= control target key end

     0   :  { %7 = vsyncpa [#allocation3], 0  ;;  %s488_s0 = inlined_call_operand.hbm [shape: f32[16,32], index: 0, kind: input, shape index: {}]   ;;  %s489_s1 = inlined_call_operand.vmem [shape: f32[1,32], index: 1, kind: input, shape index: {}]   ;;  %s490_s2 = inlined_call_operand.vmem [shape: f32[16,1], index: 2, kind: output, shape index: {}]  }
   0x1   :  { %9 = vsyncpa [#allocation3 + $0x1], 0  ;;  %s378_s9 = smov 0   ;;  %s380_s10 = smov 0  }
   0x2   :  { %s382_s11 = smov 0   ;;  %s384_s12 = smov 0  }
   0x3 LB: > { %s397_s13 = sadd.s32 4294967295, %s360_s12   ;;  %s400_s14 = sadd.s32 1, %s360_s12   ;;  %s360_s12 = sphi %s384_s12, %s498_s12   ;;  %s356_s11 = sphi %s382_s11, %s497_s11   ;;  %s352_s10 = sphi %s380_s10, %s496_s10   ;;  %s348_s9 = sphi %s378_s9, %s495_s9  }
   0x4   : > { %s19_s15 = ssub.s32 %s360_s12, %s400_s14  ;;  %s22_s16 = sadd.s32 1, %s356_s11 }
   0x5   : > { %p20_p0 = scmp.eq.s32.totalorder %s19_s15, 0  ;;  %p29_p1 = scmp.ne.s32.totalorder %s356_s11, %s352_s10 }
   0x6   : > { %p30_p2 = scmp.eq.s32.totalorder %s360_s12, 0  ;;  %p35_p3 = scmp.ne.s32.totalorder %s352_s10, %s348_s9 }
   0x7   : > { %s410_s17 = scalar_select %p20_p0, %s356_s11, %s22_s16  }
   0x8   : > { %p31_p4 = por %p30_p2, %p29_p1  ;;  %p36_p5 = scmp.eq.s32.totalorder %s397_s13, 0 }
   0x9   : > { %p261_p6 = scmp.lt.s32.totalorder %s360_s12, 2  ;;  %s109_s19 = sand.u32 1, %s356_s11  }
   0xa   : > { %p414_p7 = por %p36_p5, %p35_p3  ;;  %s246_s20 = sshll.u32 %s109_s19, 3 }
   0xb   : > { %s247_s21 = sshll.u32 %s360_s12, 7  ;;  %s113_s25 = scalar_lea.vmem [#allocation2], %s246_s20 }
   0xc   : > { %s423_s24 = scalar_lea.hbm %s488_s0, %s247_s21  ;;  %s120_s26 = sshll.u32 %s113_s25, 4  ;;  %s425_s26 = int_to_ptr.vmem [resolvable:$true] %s120_s26 }
   0xd   : > { %p427_p8 = pnand %p261_p6, %p31_p4  ;;  %s110_s28 = scalar_lea.sflag [#allocation3], %s109_s19 }
   0xe   : > { %s296_s29 = scalar_lea.hbm %s423_s24, 128  ;;  %s301_s4 = scalar_lea.hbm %s488_s0, 256 }
   0xf   : > { %p297_p11 = scmp.ne.s32.totalorder %s423_s24, %s296_s29  ;;  %p298_p12 = pneg %p427_p8 }
  0x10   : > { %p302_p1 = scmp.lt.u32.totalorder %s423_s24, %s488_s0  ;;  %p303_p2 = scmp.lt.u32.totalorder %s301_s4, %s296_s29 }
  0x11   : > { %p299_p13 = pnand %p298_p12, %p297_p11  ;;  %p305_p4 = scmp.lt.u32.totalorder %s296_s29, %s423_s24 }
  0x12   : > { %p304_p3 = por %p303_p2, %p302_p1 }
  0x13   : > { %p300_p0 = pneg %p299_p13 }
  0x14   : > { %p306_p5 = por %p305_p4, %p304_p3 }
  0x16   : > { %p307_p6 = pnand %p306_p5, %p300_p0 }
  0x18   : > { %310 = shalt.err (!%p307_p6)
}
  0x19   : > { %s311_s7 = scalar_lea.vmem %s425_s26, 128  ;;  %s362_s8 = smov [#allocation2]  }
  0x1a   : > { %p312_p11 = scmp.ne.s32.totalorder %s425_s26, %s311_s7  ;;  %s316_s9 = sshll.u32 %s362_s8, 4  ;;  %s317_s9 = int_to_ptr.vmem [resolvable:$false] %s316_s9 }
  0x1b   : > { %s318_s15 = scalar_lea.vmem %s317_s9, 256  ;;  %p319_p10 = scmp.lt.s32.totalorder %s425_s26, %s317_s9 }
  0x1c   : > { %p314_p13 = pnand %p312_p11, %p298_p12  ;;  %p320_p1 = scmp.lt.s32.totalorder %s318_s15, %s311_s7 }
  0x1e   : > { %p315_p9 = pneg %p314_p13  ;;  %p321_p2 = por %p320_p1, %p319_p10 }
  0x20   : > { %p322_p3 = pnand %p321_p2, %p315_p9 }
  0x22   : > { %325 = shalt.err (!%p322_p3)
}
  0x23   : > { %260 = dma.hbm_to_vmem [thread:$0]  (!%p427_p8), %s423_s24, 128, %s425_s26, %s110_s28  }
  0x24   : > { %p493_p0 = scmp.lt.s32.totalorder %s360_s12, 3  ;;  %p494_p4 = scmp.ge.s32.totalorder %s360_s12, 1 }
  0x26   : > { %p126_p12 = pnand %p494_p4, %p493_p0 }
  0x27   : > { %s131_s16 = sand.u32 (!%p126_p12), 1, %s352_s10  }
  0x28   : > { %129 = sbr.rel (%p126_p12) target bundleno = 213 (0xd5), region = 28  ;;  %s249_s19 = sshll.u32 (!%p126_p12), %s131_s16, 3 }
  0x29   : > { %s132_s20 = scalar_lea.sflag (!%p126_p12), [#allocation3], %s131_s16  ;;  %s135_s21 = scalar_lea.vmem (!%p126_p12), [#allocation2], %s249_s19 }
  0x2f   : > { %343 = dma.done.wait (%p414_p7), %s132_s20, 128  }
  0x30   : > { %345 = vsyncadd (%p414_p7), %s132_s20, 4294967168  ;;  %v159_v0 = vld [vmem:[%s135_s21] sm:$0xff]  ;;  %vm168_vm0 = vcmask 261120   ;;  %p155_p8 = scmp.lt.s32.totalorder %s397_s13, 1  ;;  %vm176_vm1 = vcmask 7168  }
  0x31   : > { %v251_v1 = vld [vmem:[%s489_s1] ss:$0 sm:$0xff] }
  0x32   : > { %v167_v2 = vmul.f32 %v251_v1, %v159_v0  ;;  %s500_s13 = smov (!%p155_p8, %s397_s13), 1 }
  0x33   : > { %s250_s12 = sshll.u32 %s500_s13, 3 }
  0x34   : > { %v169_v3 = vsel %vm168_vm0, %v167_v2, 0.0  ;;  %s158_s25 = scalar_lea.vmem %s490_s2, %s250_s12 }
  0x35   : > { %170 = vadd.xlane.f32.xlu0 %v169_v3 }
  0xc2   : > { %v171_v4 = vpop.xlane.xlu0 %170 }
  0xc3   : > { %294 = vtanh.f32 %v171_v4 }
  0xcd   : > { %v295_v5 = vpop.eup %294 }
  0xce   : > { %v173_v6 = vadd.f32 1.5, %v295_v5 }
  0xd0   : > { %v174_v7 = vmul.f32 60.0, %v173_v6 }
  0xd2   : > { %v254_v8 = vround.rtne.f32 %v174_v7 }
  0xd4   : > { %177 = vst.msk [vmem:[%s158_s25] sm:$0xff] %vm176_vm1, %v254_v8 }
  0xd5 PF: > { %p12_p7 = scmp.ge.s32.totalorder %s400_s14, 4   ;;  %s495_s9 = smov %s352_s10 }
  0xd6   : > { %s496_s10 = smov %s356_s11  ;;  %s497_s11 = smov %s410_s17 }
  0xd7   : > { %s498_s12 = smov %s400_s14  ;;  %14 = sbr.rel (!%p12_p7) target bundleno = 3 (0x3), region = 68 }
  0xde   :  { %197 = vsyncpa [#allocation3], 1 }
  0xdf   :  { %199 = vsyncpa [#allocation3 + $0x1], 1 }

</bundles_post_ra>
